<compile_context>
chip_gen: v7x
topology: tpu7x:2x2x1
jax: 0.10.0
libtpu: 0.0.40
codegen_flags: <defaults>
</compile_context>

<pallas_src>
import functools

import jax
import jax.numpy as jnp
from jax.experimental import pallas as pl
from jax.experimental.pallas import tpu as pltpu


# ---------------- kernel bodies ----------------

def _bm_kernel(x_ref, w1_ref, w2_ref, wh_ref, b_ref, out_ref, *,
               h0, h1, n_actions, dueling):
    """Batch-major ([batch, features]) forward, whole problem in one VMEM block.

    Used for the small-batch (typical per-step RL) case where launch overhead dominates.
    b_ref packs [b1 | b2 | b_head] along the lane axis; slices are static.
    """
    mm = w1_ref.dtype                       # matmul operand dtype (f32 or bf16)
    x = x_ref[...].astype(mm)               # in-kernel cast; no-op for f32
    b1 = b_ref[:, 0:h0]
    b2 = b_ref[:, h0:h0 + h1]
    bh = b_ref[:, h0 + h1:]
    a1 = jnp.maximum(
        jnp.dot(x, w1_ref[...], preferred_element_type=jnp.float32) + b1, 0.0)
    a2 = jnp.maximum(
        jnp.dot(a1.astype(mm), w2_ref[...], preferred_element_type=jnp.float32) + b2, 0.0)
    head = jnp.dot(a2.astype(mm), wh_ref[...],
                   preferred_element_type=jnp.float32) + bh      # [B, hout]
    if dueling:
        a = head[:, :n_actions]                                  # [B, A]
        v = head[:, n_actions:n_actions + 1]                     # [B, 1]
        scale = 1.0 / float(a.shape[0] * a.shape[1])             # static -> Python const
        out_ref[...] = (v + a - jnp.sum(a) * scale).astype(out_ref.dtype)
    else:
        out_ref[...] = head.astype(out_ref.dtype)


def _fm_kernel(x_ref, w1_ref, w2_ref, wh_ref, b_ref, out_ref, *,
               h0, h1, n_actions, combine_dueling):
    """Feature-major / batch-on-lane forward: activations are [features, batch_tile].

    Weights are in PyTorch orientation [out, in]; biases packed as a [h0+h1+hout, 1]
    column and sliced with static sublane indices.  Used for large batches (no-grid on
    v5e/v6e, 2-tile "parallel" grid on v7x).  When combine_dueling=False the raw fused
    head [hout, Bt] is written and the (tiny) dueling combine happens in the wrapper.
    """
    mm = w1_ref.dtype
    xT = x_ref[...].astype(mm)              # [in, Bt]
    b1 = b_ref[0:h0, :]                     # [h0, 1]  -> broadcast over lanes (batch)
    b2 = b_ref[h0:h0 + h1, :]
    bh = b_ref[h0 + h1:, :]
    a1 = jnp.maximum(
        jnp.dot(w1_ref[...], xT, preferred_element_type=jnp.float32) + b1, 0.0)
    a2 = jnp.maximum(
        jnp.dot(w2_ref[...], a1.astype(mm), preferred_element_type=jnp.float32) + b2, 0.0)
    head = jnp.dot(wh_ref[...], a2.astype(mm),
                   preferred_element_type=jnp.float32) + bh       # [hout, Bt]
    if combine_dueling:
        a = head[:n_actions, :]                                   # [A, Bt]
        v = head[n_actions:n_actions + 1, :]                      # [1, Bt]
        scale = 1.0 / float(a.shape[0] * a.shape[1])
        out_ref[...] = (v + a - jnp.sum(a) * scale).astype(out_ref.dtype)
    else:
        out_ref[...] = head.astype(out_ref.dtype)


# ---------------- parameter fusion (call ONCE per parameter update) ----------------

def fuse_params(params, *, dueling=True, use_bf16=False):
    """Build the fused operand sets used by the kernels.

    params holds math-orientation weights [in, out] and row biases [1, out]
    (a real PyTorch checkpoint stores weights as [out, in]; transpose for 'bm' /
    use directly for 'fm').  Returns both layouts:
      bm: batch-major operands  (w: [in, out],  packed bias: [1, h0+h1+hout])
      fm: feature-major operands (w: [out, in], packed bias: [h0+h1+hout, 1])
    Matmul operands optionally cast to bf16; biases stay f32 (added after f32 acc).
    """
    w1, b1 = params["w1"], params["b1"]
    w2, b2 = params["w2"], params["b2"]
    if dueling:
        wh = jnp.concatenate([params["wa"], params["wv"]], axis=1)   # [H1, A+1]
        bh = jnp.concatenate([params["ba"], params["bv"]], axis=1)   # [1,  A+1]
    else:
        wh, bh = params["wo"], params["bo"]
    mm = jnp.bfloat16 if use_bf16 else jnp.float32
    in_dim, h0 = w1.shape
    h1, hout = w2.shape[1], wh.shape[1]

    bm = dict(w1=w1.astype(mm), w2=w2.astype(mm), wh=wh.astype(mm),
              b=jnp.concatenate([b1, b2, bh], axis=1).astype(jnp.float32))
    fm = dict(w1=w1.T.astype(mm), w2=w2.T.astype(mm), wh=wh.T.astype(mm),
              b=jnp.concatenate([b1.T, b2.T, bh.T], axis=0).astype(jnp.float32))
    return dict(bm=bm, fm=fm, dims=(in_dim, h0, h1, hout), dueling=dueling)


# ---------------- forward wrapper ----------------

def neural_network_forward(state, fused, *, batch_tiles=1, feature_major_threshold=128):
    """state: [B, input_dim] float32.  fused: output of fuse_params().

    batch_tiles=1 (default): no grid — recommended for v5e/v6e and any small batch.
    batch_tiles=2          : two-tile batch grid (one tile per v7x TensorCore,
                             "parallel"); requires B % 256 == 0, else falls back.
    """
    B, _ = state.shape
    in_dim, h0, h1, hout = fused["dims"]
    dueling = fused["dueling"]
    n_actions = hout - 1 if dueling else hout
    vmem = pl.BlockSpec(memory_space=pltpu.VMEM)

    # ---- small batch: batch-major, no grid, 5 operands, dueling combine in-kernel ----
    if B < feature_major_threshold:
        p = fused["bm"]
        kernel = functools.partial(_bm_kernel, h0=h0, h1=h1,
                                   n_actions=n_actions, dueling=dueling)
        return pl.pallas_call(
            kernel,
            out_shape=jax.ShapeDtypeStruct((B, n_actions), jnp.float32),
            in_specs=[vmem] * 5,
            out_specs=vmem,
        )(state, p["w1"], p["w2"], p["wh"], p["b"])

    # ---- large batch: feature-major (batch-on-lane) ----
    p = fused["fm"]
    xT = state.T                                     # one tiny wrapper transpose
    use_grid = (batch_tiles == 2) and (B % 256 == 0)

    if not use_grid:
        # Single VMEM block (v5e/v6e default; also fine on v7x). Dueling mean in-kernel.
        kernel = functools.partial(_fm_kernel, h0=h0, h1=h1,
                                   n_actions=n_actions, combine_dueling=dueling)
        headT = pl.pallas_call(
            kernel,
            out_shape=jax.ShapeDtypeStruct((n_actions, B), jnp.float32),
            in_specs=[vmem] * 5,
            out_specs=vmem,
        )(xT, p["w1"], p["w2"], p["wh"], p["b"])
        return headT.T

    # v7x megacore: exactly 2 batch tiles, one per TensorCore; weights stay resident.
    block_b = B // 2
    kernel = functools.partial(_fm_kernel, h0=h0, h1=h1,
                               n_actions=n_actions, combine_dueling=False)
    resident = lambda a: pl.BlockSpec(a.shape, lambda i: (0, 0))
    headT = pl.pallas_call(
        kernel,
        grid=(2,),
        out_shape=jax.ShapeDtypeStruct((hout, B), jnp.float32),
        in_specs=[pl.BlockSpec((in_dim, block_b), lambda i: (0, i)),
                  resident(p["w1"]), resident(p["w2"]),
                  resident(p["wh"]), resident(p["b"])],
        out_specs=pl.BlockSpec((hout, block_b), lambda i: (0, i)),
        compiler_params=pltpu.CompilerParams(dimension_semantics=("parallel",)),
    )(xT, p["w1"], p["w2"], p["wh"], p["b"])

    if dueling:
        # Global adv mean couples the two tiles; combine on the tiny [hout, B] array.
        a = headT[:n_actions, :]
        v = headT[n_actions:, :]
        return (v + a - jnp.mean(a)).T
    return headT.T


# ---------------- deterministic parameter init (synthetic) ----------------

def init_params(key, input_dim, hidden, output_dim):
    """hidden = (h0, h1). Weights in math orientation [in, out]; biases [1, out]."""
    ks = jax.random.split(key, 8)

    def lin(kw, kb, fan_in, fan_out):
        bound = 1.0 / jnp.sqrt(fan_in)
        w = jax.random.uniform(kw, (fan_in, fan_out), jnp.float32, -bound, bound)
        b = jax.random.uniform(kb, (1, fan_out), jnp.float32, -bound, bound)
        return w, b

    w1, b1 = lin(ks[0], ks[1], input_dim, hidden[0])
    w2, b2 = lin(ks[2], ks[3], hidden[0], hidden[1])
    wv, bv = lin(ks[4], ks[5], hidden[1], 1)
    wa, ba = lin(ks[6], ks[7], hidden[1], output_dim)
    # NOTE: synthetic non-dueling head aliases the adv head weights (same shape);
    # real checkpoint loading must use the module's own `output` layer instead.
    return dict(w1=w1, b1=b1, w2=w2, b2=b2, wv=wv, bv=bv, wa=wa, ba=ba, wo=wa, bo=ba)


# ---------------- pure-JAX reference ----------------

def reference_forward(state, p, *, dueling=True):
    h1 = jnp.maximum(state @ p["w1"] + p["b1"], 0.0)
    h2 = jnp.maximum(h1 @ p["w2"] + p["b2"], 0.0)
    if dueling:
        v = h2 @ p["wv"] + p["bv"]
        a = h2 @ p["wa"] + p["ba"]
        return v + a - jnp.mean(a)      # GLOBAL mean, as in the PyTorch source
    return h2 @ p["wo"] + p["bo"]


if __name__ == "__main__":
    key = jax.random.PRNGKey(0)
    k_x, k_p, k_big = jax.random.split(key, 3)

    input_dim, hidden, output_dim = 16, (32, 32), 4
    params = init_params(k_p, input_dim, hidden, output_dim)

    # Fusion is done ONCE (hoisted out of the per-call path).
    fused_duel = fuse_params(params, dueling=True)
    fused_plain = fuse_params(params, dueling=False)

    # 1) small batch (typical per-step RL call): batch-major, no grid, 5 operands
    state = jax.random.normal(k_x, (8, input_dim), jnp.float32)
    out = jax.block_until_ready(neural_network_forward(state, fused_duel))
    ref = reference_forward(state, params, dueling=True)
    assert out.shape == (8, output_dim)
    assert jnp.allclose(out, ref, atol=1e-5, rtol=1e-5)

    out2 = jax.block_until_ready(neural_network_forward(state, fused_plain))
    ref2 = reference_forward(state, params, dueling=False)
    assert jnp.allclose(out2, ref2, atol=1e-5, rtol=1e-5)

    # 2) large batch: feature-major (batch-on-lane), single VMEM block (v5e/v6e default)
    big = jax.random.normal(k_big, (512, input_dim), jnp.float32)
    ref3 = reference_forward(big, params, dueling=True)
    out3 = jax.block_until_ready(neural_network_forward(big, fused_duel))
    assert jnp.allclose(out3, ref3, atol=1e-4, rtol=1e-4)

    ref4 = reference_forward(big, params, dueling=False)
    out4 = jax.block_until_ready(neural_network_forward(big, fused_plain))
    assert jnp.allclose(out4, ref4, atol=1e-4, rtol=1e-4)

    # 3) large batch, 2-tile batch grid (one tile per v7x TensorCore; harmless elsewhere)
    out5 = jax.block_until_ready(
        neural_network_forward(big, fused_duel, batch_tiles=2))
    assert jnp.allclose(out5, ref3, atol=1e-4, rtol=1e-4)
    out6 = jax.block_until_ready(
        neural_network_forward(big, fused_plain, batch_tiles=2))
    assert jnp.allclose(out6, ref4, atol=1e-4, rtol=1e-4)

    # 4) bf16 matmul-operand variant (x cast happens in-kernel; f32 accumulation)
    fused_duel_bf16 = fuse_params(params, dueling=True, use_bf16=True)
    out7 = jax.block_until_ready(neural_network_forward(big, fused_duel_bf16))
    assert jnp.allclose(out7, ref3, atol=5e-2, rtol=5e-2)

    print("KERNEL_OK")
</pallas_src>

<mosaic_0001>
module attributes {stable_mosaic.version = 11 : i64} {
  func.func @_bm_kernel(%arg0: memref<8x16xf32, #tpu.memory_space<vmem>>, %arg1: memref<16x32xf32, #tpu.memory_space<vmem>>, %arg2: memref<32x32xf32, #tpu.memory_space<vmem>>, %arg3: memref<32x5xf32, #tpu.memory_space<vmem>>, %arg4: memref<1x69xf32, #tpu.memory_space<vmem>>, %arg5: memref<8x4xf32, #tpu.memory_space<vmem>>) attributes {dimension_semantics = [], scalar_prefetch = 0 : i64, scratch_operands = 0 : i64, tpu.core_type = #tpu.core_type<tc>} {
    %c0 = arith.constant 0 : index
    %c0_0 = arith.constant 0 : index
    %0 = vector.load %arg0[%c0, %c0_0] : memref<8x16xf32, #tpu.memory_space<vmem>>, vector<8x16xf32>
    %c0_1 = arith.constant 0 : index
    %c0_2 = arith.constant 0 : index
    %1 = vector.load %arg4[%c0_1, %c0_2] : memref<1x69xf32, #tpu.memory_space<vmem>>, vector<1x32xf32>
    %c0_3 = arith.constant 0 : index
    %c32 = arith.constant 32 : index
    %2 = vector.load %arg4[%c0_3, %c32] : memref<1x69xf32, #tpu.memory_space<vmem>>, vector<1x32xf32>
    %c0_4 = arith.constant 0 : index
    %c64 = arith.constant 64 : index
    %3 = vector.load %arg4[%c0_4, %c64] : memref<1x69xf32, #tpu.memory_space<vmem>>, vector<1x5xf32>
    %c0_5 = arith.constant 0 : index
    %c0_6 = arith.constant 0 : index
    %4 = vector.load %arg1[%c0_5, %c0_6] : memref<16x32xf32, #tpu.memory_space<vmem>>, vector<16x32xf32>
    %cst = arith.constant dense<0.000000e+00> : vector<8x32xf32>
    %5 = tpu.matmul %0, %4, %cst {dimension_numbers = #tpu.dot_dimension_numbers<[1], [0], [0], [1], [0, 0, 1, 1], [], []>} : vector<8x16xf32>, vector<16x32xf32>, vector<8x32xf32> -> vector<8x32xf32>
    %6 = vector.broadcast %1 : vector<1x32xf32> to vector<8x32xf32>
    %7 = arith.addf %5, %6 : vector<8x32xf32>
    %cst_7 = arith.constant 0.000000e+00 : f32
    %8 = vector.broadcast %cst_7 : f32 to vector<8x32xf32>
    %9 = arith.maximumf %7, %8 : vector<8x32xf32>
    %c0_8 = arith.constant 0 : index
    %c0_9 = arith.constant 0 : index
    %10 = vector.load %arg2[%c0_8, %c0_9] : memref<32x32xf32, #tpu.memory_space<vmem>>, vector<32x32xf32>
    %cst_10 = arith.constant dense<0.000000e+00> : vector<8x32xf32>
    %11 = tpu.matmul %9, %10, %cst_10 {dimension_numbers = #tpu.dot_dimension_numbers<[1], [0], [0], [1], [0, 0, 1, 1], [], []>} : vector<8x32xf32>, vector<32x32xf32>, vector<8x32xf32> -> vector<8x32xf32>
    %12 = vector.broadcast %2 : vector<1x32xf32> to vector<8x32xf32>
    %13 = arith.addf %11, %12 : vector<8x32xf32>
    %cst_11 = arith.constant 0.000000e+00 : f32
    %14 = vector.broadcast %cst_11 : f32 to vector<8x32xf32>
    %15 = arith.maximumf %13, %14 : vector<8x32xf32>
    %c0_12 = arith.constant 0 : index
    %c0_13 = arith.constant 0 : index
    %16 = vector.load %arg3[%c0_12, %c0_13] : memref<32x5xf32, #tpu.memory_space<vmem>>, vector<32x5xf32>
    %cst_14 = arith.constant dense<0.000000e+00> : vector<8x5xf32>
    %17 = tpu.matmul %15, %16, %cst_14 {dimension_numbers = #tpu.dot_dimension_numbers<[1], [0], [0], [1], [0, 0, 1, 1], [], []>} : vector<8x32xf32>, vector<32x5xf32>, vector<8x5xf32> -> vector<8x5xf32>
    %18 = vector.broadcast %3 : vector<1x5xf32> to vector<8x5xf32>
    %19 = arith.addf %17, %18 : vector<8x5xf32>
    %20 = vector.extract_strided_slice %19 {offsets = [0, 0], sizes = [8, 4], strides = [1, 1]} : vector<8x5xf32> to vector<8x4xf32>
    %21 = vector.extract_strided_slice %19 {offsets = [0, 4], sizes = [8, 1], strides = [1, 1]} : vector<8x5xf32> to vector<8x1xf32>
    %22 = vector.broadcast %21 : vector<8x1xf32> to vector<8x4xf32>
    %23 = arith.addf %22, %20 : vector<8x4xf32>
    %24 = vector.shape_cast %20 : vector<8x4xf32> to vector<1x8x4xf32>
    %cst_15 = arith.constant dense<0.000000e+00> : vector<1xf32>
    %25 = vector.multi_reduction <add>, %24, %cst_15 [1, 2] : vector<1x8x4xf32> to vector<1xf32>
    %26 = vector.shape_cast %25 : vector<1xf32> to vector<1x1x1xf32>
    %27 = vector.extract %26[0, 0, 0] : f32 from vector<1x1x1xf32>
    %cst_16 = arith.constant 3.125000e-02 : f32
    %28 = arith.mulf %27, %cst_16 : f32
    %29 = vector.broadcast %28 : f32 to vector<8x4xf32>
    %30 = arith.subf %23, %29 : vector<8x4xf32>
    %c0_17 = arith.constant 0 : index
    %c0_18 = arith.constant 0 : index
    %31 = vector.load %arg5[%c0_17, %c0_18] : memref<8x4xf32, #tpu.memory_space<vmem>>, vector<8x4xf32>
    tpu.vector_store %arg5[%c0_17, %c0_18], %30 {strides = array<i32>} : memref<8x4xf32, #tpu.memory_space<vmem>>, vector<8x4xf32>,
    return
  }
}

</mosaic_0001>

<bundles_post_ra>
// kernel: tpu_custom_call.1
= control target key start
LH: loop header
LB: loop body
LE: loop exit
PB: predicated region body
PF: predicated region fallthrough
CT: control target
= control target key end

     0   :  { %10 = vsyncpa [#allocation3], 0  ;;  %s405_s18 = smov [#allocation2]   ;;  %s494_s0 = inlined_call_operand.vmem [shape: f32[8,16], index: 0, kind: input, shape index: {}]   ;;  %s495_s1 = inlined_call_operand.hbm [shape: f32[16,32], index: 1, kind: input, shape index: {}]   ;;  %s496_s2 = inlined_call_operand.vmem [shape: f32[32,32], index: 2, kind: input, shape index: {}]   ;;  %s497_s3 = inlined_call_operand.vmem [shape: f32[32,5], index: 3, kind: input, shape index: {}]   ;;  %s498_s4 = inlined_call_operand.vmem [shape: f32[1,69], index: 4, kind: input, shape index: {}]   ;;  %s499_s5 = inlined_call_operand.vmem [shape: f32[8,4], index: 5, kind: output, shape index: {}]  }
   0x1   :  { %s18_s19 = sshll.u32 %s405_s18, 4  ;;  %s381_s22 = scalar_lea.hbm %s495_s1, 256  ;;  %s19_s19 = int_to_ptr.vmem [resolvable:$true] %s18_s19 }
   0x2   :  { %p382_p0 = scmp.ne.s32.totalorder %s495_s1, %s381_s22  ;;  %p385_p1 = scmp.lt.u32.totalorder %s381_s22, %s495_s1 }
   0x4   :  { %p387_p2 = pnand %p385_p1, %p382_p0 }
   0x6   :  { %390 = shalt.err (!%p387_p2)
}
   0x7   :  { %s391_s27 = scalar_lea.vmem %s19_s19, 256  ;;  %p396_p4 = scmp.lt.s32.totalorder %s19_s19, %s19_s19 }
   0x8   :  { %p392_p3 = scmp.ne.s32.totalorder %s19_s19, %s391_s27  ;;  %p397_p5 = scmp.lt.s32.totalorder %s391_s27, %s391_s27 }
   0xa   :  { %p398_p6 = por %p397_p5, %p396_p4 }
   0xc   :  { %p399_p7 = pnand %p398_p6, %p392_p3 }
   0xe   :  { %402 = shalt.err (!%p399_p7)
}
   0xf   :  { %s406_s28 = smov 128   ;;  %s407_s29 = smov 8  }
  0x10   :  { %24 = dma.hbm_to_vmem [thread:$0]  %s495_s1, 256, %s19_s19, [#allocation3], %s406_s28, %s406_s28, %s407_s29  }
  0x11   :  { %403 = dma.done.wait [#allocation3], 256  }
  0x12   :  { %404 = vsyncadd [#allocation3], 4294967040  ;;  %v408_v0 = vmov 0.0|0.0   ;;  %vm409_vm0 = vmmov 0   ;;  %v410_v1 = vmov 0.0   ;;  %v36_v2 = vld [vmem:[#allocation2] sm:$0xff] }
  0x13   :  { %353 = vmatprep.subr.bf16.mxu0 %v408_v0  ;;  %328 = vmatprep.mubr.msk.f32.mxu0 %vm409_vm0, %v410_v1  ;;  %v37_v3 = vld [vmem:[#allocation2 + $0x8] sm:$0xff]  ;;  %v119_v5 = vld [vmem:[%s496_s2] sm:$0xff]  ;;  %vm44_vm1 = vcmask 130048   ;;  %v121_v9 = vld [vmem:[%s496_s2 + $0x10] sm:$0xff]  ;;  %s411_s21 = smov 96   ;;  %vm126_vm2 = vcmask 261120  }
  0x14   :  { %356 = vmatprep.subr.bf16.mxu1 %v408_v0  ;;  %339 = vmatprep.mubr.msk.f32.mxu1 %vm409_vm0, %v410_v1  ;;  %v354_v4 = vpack.c.bf16 %v37_v3, %v36_v2  ;;  %v120_v6 = vld [vmem:[%s496_s2 + $0x8] sm:$0xff]  ;;  %v34_v8 = vld [vmem:[%s494_s0] sm:$0xff]  ;;  %v122_v10 = vld [vmem:[%s496_s2 + $0x18] sm:$0xff]  ;;  %s412_s24 = smov 64   ;;  %v413_v28 = vmov 4   ;;  %vm287_vm3 = vcmask 31744  }
  0x15   :  { %v357_v7 = vpack.c.bf16 %v120_v6, %v119_v5  ;;  %v360_v11 = vpack.c.bf16 %v122_v10, %v121_v9  ;;  %v307_v12 = vld [vmem:[%s498_s4] ss:$0 sm:$0xff]  ;;  %v202_v14 = vld [vmem:[%s497_s3 + $0x8] sm:$0xff]  ;;  %v203_v20 = vld [vmem:[%s497_s3 + $0x10] sm:$0xff]  ;;  %379 = vset.pattern.permute.xlu1 %v413_v28  ;;  %380 = vset.pattern.permute.xlu0 %v413_v28 }
  0x16   :  { %355 = vmatpush3.bf16.msra.mxu0 %v354_v4  ;;  %v201_v13 = vld [vmem:[%s497_s3] sm:$0xff]  ;;  %123 = vrot.lane.b32.xlu0 %v307_v12, %s411_s21  ;;  %v204_v21 = vld [vmem:[%s497_s3 + $0x18] sm:$0xff] }
  0x17   :  { %358 = vmatpush3.bf16.msra.mxu1 %v357_v7  ;;  %362 = vmatprep.subr.bf16.mxu0 %v408_v0  ;;  %v363_v15 = vpack.c.bf16 %v202_v14, %v201_v13  ;;  %v366_v22 = vpack.c.bf16 %v204_v21, %v203_v20 }
  0x18   :  { %359 = vmatprep.subr.bf16.mxu1 %v408_v0 }
  0x19   :  { %329 = vmatmul.mubr.msk.f32.vlgmr.msra.gmra.mrb[0].mxu0 %vm44_vm1, %v34_v8 }
  0x1a   :  { %350 = vmatprep.mubr.msk.f32.mxu0 %vm409_vm0, %v410_v1  ;;  %364 = vmatpush3.bf16.msra.mxu0 %v363_v15 }
  0x1b   :  { %361 = vmatpush3.bf16.msra.mxu1 %v360_v11  ;;  %365 = vmatprep.subr.bf16.mxu0 %v408_v0 }
  0x1c   :  { %205 = vrot.lane.b32.xlu0 %v307_v12, %s412_s24 }
  0x1e   :  { %367 = vmatpush3.bf16.msra.mxu0 %v366_v22 }
  0x88   :  { %v124_v23 = vpop.permute.xlu0 %123 }
  0x8e   :  { %v206_v29 = vpop.permute.xlu0 %205 }
  0xec   :  { %v114_v16 = vpop.f32.mrb[0].mxu0 }
  0xed   :  { %v115_v17 = vadd.f32 %v307_v12, %v114_v16  ;;  %v330_v18 = vpop.f32.mrb[1].mxu0 }
  0xef   :  { %v118_v19 = vmax.f32 %v115_v17, 0.0 }
  0xf1   :  { %340 = vmatmul.mubr.msk.f32.vlgmr.msra.gmra.mrb[0].mxu1 %vm126_vm2, %v118_v19 }
 0x1c4   :  { %v196_v24 = vpop.f32.mrb[0].mxu1 }
 0x1c5   :  { %v197_v25 = vadd.f32 %v196_v24, %v124_v23  ;;  %v341_v26 = vpop.f32.mrb[1].mxu1 }
 0x1c7   :  { %v200_v27 = vmax.f32 %v197_v25, 0.0 }
 0x1c9   :  { %351 = vmatmul.mubr.msk.f32.vlgmr.msra.gmra.mrb[2].mxu0 %vm126_vm2, %v200_v27 }
 0x29c   :  { %v277_v30 = vpop.f32.mrb[2].mxu0 }
 0x29d   :  { %v278_v31 = vadd.f32 %v277_v30, %v206_v29  ;;  %v352_v32 = vpop.f32.mrb[3].mxu0 }
 0x29f   :  { %v288_v33 = vsel %vm287_vm3, %v278_v31, 0.0 }
 0x2a0   :  { %289 = vadd.xlane.f32.xlu1 %v288_v33 }
 0x2b1   :  { %283 = vperm.xlu1 %379, %v278_v31  }
 0x32d   :  { %v290_v34 = vpop.xlane.xlu1 %289 }
 0x32e   :  { %v291_v35 = vrot.slane %v290_v34, 4 }
 0x330   :  { %v292_v36 = vadd.f32 %v291_v35, %v290_v34 }
 0x331   :  { %v284_v41 = vpop.permute.xlu1 %283 }
 0x332   :  { %v293_v37 = vrot.slane %v292_v36, 2  ;;  %v286_v42 = vadd.f32 %v284_v41, %v278_v31 }
 0x334   :  { %v294_v38 = vadd.f32 %v293_v37, %v292_v36 }
 0x336   :  { %v295_v39 = vrot.slane %v294_v38, 1 }
 0x338   :  { %v296_v40 = vadd.f32 %v295_v39, %v294_v38 }
 0x33a   :  { %368 = vpush %v296_v40 }
 0x36b   :  { %s369_s3 = spop %368 }
 0x36c   :  { %s298_s25 = smul.f32 0.03125, %s369_s3 }
 0x36e   :  { %v299_v43 = vstv %s298_s25 }
 0x36f   :  { %v300_v44 = vsub.f32 %v286_v42, %v299_v43 }
 0x371   :  { %301 = vst.msk [vmem:[%s499_s5] sm:$0xff] %vm287_vm3, %v300_v44 }
 0x372   :  { %306 = vsyncpa [#allocation3], 1 }

</bundles_post_ra>
